<compile_context>
chip_gen: v5e
topology: v5e:2x2
jax: 0.10.0
libtpu: 0.0.40
codegen_flags: <defaults>
</compile_context>

<pallas_src>
import jax
import jax.numpy as jnp
from jax import lax
from jax.experimental import pallas as pl
from jax.experimental.pallas import tpu as pltpu


def _round_up(x: int, m: int) -> int:
    return (x + m - 1) // m * m


def _lm_head_kernel(x_ref, w_ref, o_ref, acc_ref):
    # x_ref: (tile_m, tile_k) rows of flattened hidden states
    # w_ref: (tile_n, tile_k) vocab tile of the ORIGINAL [V, H] weight
    # o_ref: (tile_m, tile_n) logits tile
    # acc_ref: (tile_m, tile_n) f32 accumulator, resident across the K axis
    @pl.when(pl.program_id(2) == 0)
    def _():
        acc_ref[...] = jnp.zeros_like(acc_ref)

    acc_ref[...] += lax.dot_general(
        x_ref[...],
        w_ref[...],
        dimension_numbers=(((1,), (1,)), ((), ())),  # contract H with H => X @ W^T
        preferred_element_type=jnp.float32,
    )

    @pl.when(pl.program_id(2) == pl.num_programs(2) - 1)
    def _():
        o_ref[...] = acc_ref[...].astype(o_ref.dtype)


def _pick_tile_k(H: int, tile_k: int) -> int:
    """Largest multiple of 128 <= tile_k that divides H, else H (no K split)."""
    if H <= tile_k:
        return H
    if H % 128 != 0:
        return H
    k = (tile_k // 128) * 128
    while k >= 128:
        if H % k == 0:
            return k
        k -= 128
    return H


def generation_head_forward(
    hidden_states: jax.Array,
    weight: jax.Array,
    *,
    tile_m: int = 1024,
    tile_n: int = 1024,
    tile_k: int = 2048,
    out_dtype=None,
) -> jax.Array:
    """hidden_states: [B, S, H]; weight: [V, H] (PyTorch nn.Linear layout).

    Returns logits [B, S, V] = dropout(hidden_states) @ weight^T, dropout in
    eval mode (identity). For best HBM throughput pass bf16 activations and a
    bf16 weight; accumulation is always f32 on the MXU. Pass
    out_dtype=jnp.float32 to keep full-precision logits with bf16 inputs.
    """
    B, S, H = hidden_states.shape
    V, H_w = weight.shape
    assert H == H_w, "hidden size mismatch between activations and lm_head weight"

    M = B * S
    x2d = hidden_states.reshape(M, H)
    if out_dtype is None:
        out_dtype = hidden_states.dtype

    x_bytes = jnp.dtype(x2d.dtype).itemsize
    w_bytes = jnp.dtype(weight.dtype).itemsize
    o_bytes = jnp.dtype(out_dtype).itemsize

    # Sublane alignment: 16 rows/vreg for 16-bit activations, 8 for 32-bit.
    sublane = 16 if x_bytes == 2 else 8

    # Effective tile sizes, clamped to the (rounded-up) problem size.
    tile_m_eff = min(_round_up(tile_m, sublane), _round_up(M, sublane))
    tile_n_eff = min(_round_up(tile_n, 128), _round_up(V, 128))
    tile_k_eff = _pick_tile_k(H, tile_k)

    # --- VMEM budgeting (v7x has 64 MiB/TC; v5e/v6e have 128 MiB). ---
    try:
        vmem_cap = int(pltpu.get_tpu_info().vmem_capacity_bytes)
    except Exception:  # conservative fallback
        vmem_cap = 64 << 20
    vmem_budget = (vmem_cap * 3) // 4  # leave headroom for Mosaic internals

    def footprint(tm, tn, tk):
        # Double-buffered X, W, O tiles + f32 accumulator scratch.
        return (2 * tm * tk * x_bytes
                + 2 * tn * tk * w_bytes
                + 2 * tm * tn * o_bytes
                + tm * tn * 4)

    # Shrink tiles (V first, then M, then K if it stays a divisor of H) until
    # the pipelined footprint fits the budget.
    while footprint(tile_m_eff, tile_n_eff, tile_k_eff) > vmem_budget:
        if tile_n_eff > 256:
            tile_n_eff = max(128, ((tile_n_eff // 2) // 128) * 128)
        elif tile_m_eff > 256:
            tile_m_eff = max(sublane, ((tile_m_eff // 2) // sublane) * sublane)
        elif tile_k_eff >= 256 and tile_k_eff % 2 == 0 and H % (tile_k_eff // 2) == 0:
            tile_k_eff //= 2
        else:
            break

    vmem_need = footprint(tile_m_eff, tile_n_eff, tile_k_eff)
    vmem_limit = int(min(vmem_budget, max(32 << 20, int(vmem_need * 1.25))))
    vmem_limit = max(vmem_limit, vmem_need)  # never below what we actually use

    num_i = pl.cdiv(M, tile_m_eff)
    num_j = pl.cdiv(V, tile_n_eff)
    num_k = H // tile_k_eff  # exact by construction of tile_k_eff
    grid = (num_i, num_j, num_k)

    cost = pl.CostEstimate(
        flops=2 * M * V * H,
        transcendentals=0,
        # X is re-read once per V tile, W once per M tile, O written once.
        bytes_accessed=(M * H * x_bytes * num_j
                        + V * H * w_bytes * num_i
                        + M * V * o_bytes),
    )

    out2d = pl.pallas_call(
        _lm_head_kernel,
        out_shape=jax.ShapeDtypeStruct((M, V), out_dtype),
        grid_spec=pltpu.PrefetchScalarGridSpec(
            num_scalar_prefetch=0,
            grid=grid,
            in_specs=[
                # row x K tile of flattened hidden states
                pl.BlockSpec((tile_m_eff, tile_k_eff), lambda i, j, k: (i, k)),
                # vocab x K tile of the original [V, H] weight (contiguous rows)
                pl.BlockSpec((tile_n_eff, tile_k_eff), lambda i, j, k: (j, k)),
            ],
            out_specs=pl.BlockSpec((tile_m_eff, tile_n_eff), lambda i, j, k: (i, j)),
            scratch_shapes=[pltpu.VMEM((tile_m_eff, tile_n_eff), jnp.float32)],
        ),
        compiler_params=pltpu.CompilerParams(
            dimension_semantics=("parallel", "parallel", "arbitrary"),
            vmem_limit_bytes=vmem_limit,
        ),
        cost_estimate=cost,
    )(x2d, weight)

    return out2d.reshape(B, S, V)


if __name__ == "__main__":
    # Small shapes consistent with the module's forward.
    batch, seq, hidden, vocab = 2, 8, 32, 256

    key = jax.random.PRNGKey(0)
    k_x, k_w = jax.random.split(key)

    hidden_states = jax.random.normal(k_x, (batch, seq, hidden), dtype=jnp.float32)
    # Deterministic lm_head weight, PyTorch nn.Linear layout: [vocab, hidden].
    lm_head_weight = (
        jax.random.normal(k_w, (vocab, hidden), dtype=jnp.float32)
        * (1.0 / hidden ** 0.5)
    )

    logits = generation_head_forward(hidden_states, lm_head_weight)
    logits = jax.block_until_ready(logits)

    # Sanity check against plain-JAX reference (dropout is identity in eval).
    ref = jnp.einsum("bsh,vh->bsv", hidden_states, lm_head_weight)
    assert logits.shape == (batch, seq, vocab)
    assert jnp.allclose(logits, ref, atol=1e-4, rtol=1e-4)

    print("KERNEL_OK")
</pallas_src>

<mosaic_0001>
module attributes {stable_mosaic.version = 11 : i64} {
  func.func @_lm_head_kernel(%arg0: i32, %arg1: i32, %arg2: i32, %arg3: memref<16x32xf32, #tpu.memory_space<vmem>>, %arg4: memref<256x32xf32, #tpu.memory_space<vmem>>, %arg5: memref<16x256xf32, #tpu.memory_space<vmem>>, %arg6: memref<16x256xf32, #tpu.memory_space<vmem>>) attributes {dimension_semantics = [#tpu.dimension_semantics<parallel>, #tpu.dimension_semantics<parallel>, #tpu.dimension_semantics<arbitrary>], iteration_bounds = array<i64: 1, 1, 1>, scalar_prefetch = 0 : i64, scratch_operands = 1 : i64, tpu.core_type = #tpu.core_type<tc>, window_params = [{transform_indices = @transform_0, window_bounds = array<i64: 16, 32>}, {transform_indices = @transform_1, window_bounds = array<i64: 256, 32>}, {transform_indices = @transform_2, window_bounds = array<i64: 16, 256>}]} {
    %c0_i32 = arith.constant 0 : i32
    %0 = arith.cmpi eq, %arg2, %c0_i32 : i32
    %1 = arith.extui %0 : i1 to i32
    %c0_i32_0 = arith.constant 0 : i32
    %2 = arith.cmpi ne, %1, %c0_i32_0 : i32
    scf.if %2 {
      %cst_10 = arith.constant 0.000000e+00 : f32
      %12 = vector.broadcast %cst_10 : f32 to vector<16x256xf32>
      %c0_11 = arith.constant 0 : index
      %c0_12 = arith.constant 0 : index
      %13 = vector.load %arg6[%c0_11, %c0_12] : memref<16x256xf32, #tpu.memory_space<vmem>>, vector<16x256xf32>
      tpu.vector_store %arg6[%c0_11, %c0_12], %12 {strides = array<i32>} : memref<16x256xf32, #tpu.memory_space<vmem>>, vector<16x256xf32>,
    } else {
    }
    %c0 = arith.constant 0 : index
    %c0_1 = arith.constant 0 : index
    %3 = vector.load %arg6[%c0, %c0_1] : memref<16x256xf32, #tpu.memory_space<vmem>>, vector<16x256xf32>
    %c0_2 = arith.constant 0 : index
    %c0_3 = arith.constant 0 : index
    %4 = vector.load %arg3[%c0_2, %c0_3] : memref<16x32xf32, #tpu.memory_space<vmem>>, vector<16x32xf32>
    %c0_4 = arith.constant 0 : index
    %c0_5 = arith.constant 0 : index
    %5 = vector.load %arg4[%c0_4, %c0_5] : memref<256x32xf32, #tpu.memory_space<vmem>>, vector<256x32xf32>
    %cst = arith.constant dense<0.000000e+00> : vector<16x256xf32>
    %6 = tpu.matmul %4, %5, %cst {dimension_numbers = #tpu.dot_dimension_numbers<[1], [1], [0], [0], [0, 0, 1, 0], [], []>} : vector<16x32xf32>, vector<256x32xf32>, vector<16x256xf32> -> vector<16x256xf32>
    %7 = arith.addf %3, %6 : vector<16x256xf32>
    %c0_6 = arith.constant 0 : index
    %c0_7 = arith.constant 0 : index
    %8 = vector.load %arg6[%c0_6, %c0_7] : memref<16x256xf32, #tpu.memory_space<vmem>>, vector<16x256xf32>
    tpu.vector_store %arg6[%c0_6, %c0_7], %7 {strides = array<i32>} : memref<16x256xf32, #tpu.memory_space<vmem>>, vector<16x256xf32>,
    %c0_i32_8 = arith.constant 0 : i32
    %9 = arith.cmpi eq, %arg2, %c0_i32_8 : i32
    %10 = arith.extui %9 : i1 to i32
    %c0_i32_9 = arith.constant 0 : i32
    %11 = arith.cmpi ne, %10, %c0_i32_9 : i32
    scf.if %11 {
      %c0_10 = arith.constant 0 : index
      %c0_11 = arith.constant 0 : index
      %12 = vector.load %arg6[%c0_10, %c0_11] : memref<16x256xf32, #tpu.memory_space<vmem>>, vector<16x256xf32>
      %c0_12 = arith.constant 0 : index
      %c0_13 = arith.constant 0 : index
      %13 = vector.load %arg5[%c0_12, %c0_13] : memref<16x256xf32, #tpu.memory_space<vmem>>, vector<16x256xf32>
      tpu.vector_store %arg5[%c0_12, %c0_13], %12 {strides = array<i32>} : memref<16x256xf32, #tpu.memory_space<vmem>>, vector<16x256xf32>,
    } else {
    }
    return
  }
  func.func @transform_0(%arg0: i32, %arg1: i32, %arg2: i32) -> (i32, i32) {
    %c0_i32 = arith.constant 0 : i32
    return %arg0, %arg2 : i32, i32
  }
  func.func @transform_1(%arg0: i32, %arg1: i32, %arg2: i32) -> (i32, i32) {
    %c0_i32 = arith.constant 0 : i32
    return %arg1, %arg2 : i32, i32
  }
  func.func @transform_2(%arg0: i32, %arg1: i32, %arg2: i32) -> (i32, i32) {
    %c0_i32 = arith.constant 0 : i32
    return %arg0, %arg1 : i32, i32
  }
}

</mosaic_0001>

<bundles_post_ra>
// kernel: tpu_custom_call.1
= control target key start
LH: loop header
LB: loop body
LE: loop exit
PB: predicated region body
PF: predicated region fallthrough
CT: control target
= control target key end

     0   :  { %vm58_vm0 = vcmask 261120   ;;  %s532_s0 = inlined_call_operand.vmem [shape: f32[16,32], index: 0, kind: input, shape index: {}]   ;;  %s533_s1 = inlined_call_operand.vmem [shape: f32[256,32], index: 1, kind: input, shape index: {}]   ;;  %s534_s2 = inlined_call_operand.hbm [shape: f32[16,256], index: 2, kind: output, shape index: {}]  }
   0x1   :  { %v41_v0 = vld [vmem:[%s533_s1 + $0x78] sm:$0xff]  ;;  %v40_v2 = vld [vmem:[%s533_s1 + $0x70] sm:$0xff]  ;;  %v39_v4 = vld [vmem:[%s533_s1 + $0x68] sm:$0xff] }
   0x2   :  { %v57_v1 = vld [vmem:[%s533_s1 + $0xf8] sm:$0xff]  ;;  %280 = vmatpush.xpose.msk.msra.mxu2 %vm58_vm0, %v41_v0  ;;  %v56_v3 = vld [vmem:[%s533_s1 + $0xf0] sm:$0xff]  ;;  %244 = vmatpush.xpose.msk.msra.mxu0 %vm58_vm0, %v41_v0  ;;  %v55_v5 = vld [vmem:[%s533_s1 + $0xe8] sm:$0xff] }
   0x3   :  { %296 = vmatpush.xpose.msk.msra.mxu3 %vm58_vm0, %v57_v1  ;;  %262 = vmatpush.xpose.msk.msra.mxu1 %vm58_vm0, %v57_v1 }
   0x6   :  { %281 = vmatpush.xpose.msk.msra.mxu2 %vm58_vm0, %v40_v2  ;;  %245 = vmatpush.xpose.msk.msra.mxu0 %vm58_vm0, %v40_v2 }
   0x7   :  { %297 = vmatpush.xpose.msk.msra.mxu3 %vm58_vm0, %v56_v3  ;;  %263 = vmatpush.xpose.msk.msra.mxu1 %vm58_vm0, %v56_v3 }
   0x8   :  { %7 = vsyncpa [#allocation4], 0  ;;  %v38_v6 = vld [vmem:[%s533_s1 + $0x60] sm:$0xff]  ;;  %v37_v8 = vld [vmem:[%s533_s1 + $0x58] sm:$0xff]  ;;  %s232_s24 = sshll.u32 %s534_s2, 4  ;;  %s343_s25 = smov 16   ;;  %s233_s24 = int_to_ptr.hbm [resolvable:$true] %s232_s24 }
   0x9   :  { %v54_v7 = vld [vmem:[%s533_s1 + $0xe0] sm:$0xff]  ;;  %v53_v9 = vld [vmem:[%s533_s1 + $0xd8] sm:$0xff]  ;;  %v36_v10 = vld [vmem:[%s533_s1 + $0x50] sm:$0xff] }
   0xa   :  { %282 = vmatpush.xpose.msk.msra.mxu2 %vm58_vm0, %v39_v4  ;;  %246 = vmatpush.xpose.msk.msra.mxu0 %vm58_vm0, %v39_v4  ;;  %v52_v11 = vld [vmem:[%s533_s1 + $0xd0] sm:$0xff]  ;;  %v35_v12 = vld [vmem:[%s533_s1 + $0x48] sm:$0xff]  ;;  %v34_v14 = vld [vmem:[%s533_s1 + $0x40] sm:$0xff] }
   0xb   :  { %298 = vmatpush.xpose.msk.msra.mxu3 %vm58_vm0, %v55_v5  ;;  %264 = vmatpush.xpose.msk.msra.mxu1 %vm58_vm0, %v55_v5  ;;  %v51_v13 = vld [vmem:[%s533_s1 + $0xc8] sm:$0xff]  ;;  %v50_v15 = vld [vmem:[%s533_s1 + $0xc0] sm:$0xff]  ;;  %v33_v16 = vld [vmem:[%s533_s1 + $0x38] sm:$0xff] }
   0xc   :  { %v49_v17 = vld [vmem:[%s533_s1 + $0xb8] sm:$0xff]  ;;  %v32_v18 = vld [vmem:[%s533_s1 + $0x30] sm:$0xff]  ;;  %v31_v20 = vld [vmem:[%s533_s1 + $0x28] sm:$0xff] }
   0xd   :  { %v48_v19 = vld [vmem:[%s533_s1 + $0xb0] sm:$0xff]  ;;  %v47_v21 = vld [vmem:[%s533_s1 + $0xa8] sm:$0xff]  ;;  %v30_v22 = vld [vmem:[%s533_s1 + $0x20] sm:$0xff] }
   0xe   :  { %283 = vmatpush.xpose.msk.msra.mxu2 %vm58_vm0, %v38_v6  ;;  %247 = vmatpush.xpose.msk.msra.mxu0 %vm58_vm0, %v38_v6  ;;  %v46_v23 = vld [vmem:[%s533_s1 + $0xa0] sm:$0xff]  ;;  %v29_v24 = vld [vmem:[%s533_s1 + $0x18] sm:$0xff]  ;;  %v28_v26 = vld [vmem:[%s533_s1 + $0x10] sm:$0xff] }
   0xf   :  { %299 = vmatpush.xpose.msk.msra.mxu3 %vm58_vm0, %v54_v7  ;;  %265 = vmatpush.xpose.msk.msra.mxu1 %vm58_vm0, %v54_v7  ;;  %v45_v25 = vld [vmem:[%s533_s1 + $0x98] sm:$0xff]  ;;  %v44_v27 = vld [vmem:[%s533_s1 + $0x90] sm:$0xff]  ;;  %v27_v28 = vld [vmem:[%s533_s1 + $0x8] sm:$0xff] }
  0x10   :  { %v43_v29 = vld [vmem:[%s533_s1 + $0x88] sm:$0xff]  ;;  %v26_v30 = vld [vmem:[%s533_s1] sm:$0xff] }
  0x11   :  { %v42_v31 = vld [vmem:[%s533_s1 + $0x80] sm:$0xff]  ;;  %v25_v32 = vld [vmem:[%s532_s0 + $0x8] sm:$0xff]  ;;  %s341_s1 = smov [#allocation3]  }
  0x12   :  { %284 = vmatpush.xpose.msk.msra.mxu2 %vm58_vm0, %v37_v8  ;;  %248 = vmatpush.xpose.msk.msra.mxu0 %vm58_vm0, %v37_v8  ;;  %v24_v33 = vld [vmem:[%s532_s0] sm:$0xff]  ;;  %s230_s21 = sshll.u32 %s341_s1, 4  ;;  %s342_s0 = smov 256   ;;  %s231_s21 = int_to_ptr.vmem [resolvable:$true] %s230_s21 }
  0x13   :  { %300 = vmatpush.xpose.msk.msra.mxu3 %vm58_vm0, %v53_v9  ;;  %266 = vmatpush.xpose.msk.msra.mxu1 %vm58_vm0, %v53_v9 }
  0x16   :  { %285 = vmatpush.xpose.msk.msra.mxu2 %vm58_vm0, %v36_v10  ;;  %249 = vmatpush.xpose.msk.msra.mxu0 %vm58_vm0, %v36_v10 }
  0x17   :  { %301 = vmatpush.xpose.msk.msra.mxu3 %vm58_vm0, %v52_v11  ;;  %267 = vmatpush.xpose.msk.msra.mxu1 %vm58_vm0, %v52_v11 }
  0x1a   :  { %286 = vmatpush.xpose.msk.msra.mxu2 %vm58_vm0, %v35_v12  ;;  %250 = vmatpush.xpose.msk.msra.mxu0 %vm58_vm0, %v35_v12 }
  0x1b   :  { %302 = vmatpush.xpose.msk.msra.mxu3 %vm58_vm0, %v51_v13  ;;  %268 = vmatpush.xpose.msk.msra.mxu1 %vm58_vm0, %v51_v13 }
  0x1e   :  { %287 = vmatpush.xpose.msk.msra.mxu2 %vm58_vm0, %v34_v14  ;;  %251 = vmatpush.xpose.msk.msra.mxu0 %vm58_vm0, %v34_v14 }
  0x1f   :  { %303 = vmatpush.xpose.msk.msra.mxu3 %vm58_vm0, %v50_v15  ;;  %269 = vmatpush.xpose.msk.msra.mxu1 %vm58_vm0, %v50_v15 }
  0x22   :  { %288 = vmatpush.xpose.msk.msra.mxu2 %vm58_vm0, %v33_v16  ;;  %252 = vmatpush.xpose.msk.msra.mxu0 %vm58_vm0, %v33_v16 }
  0x23   :  { %304 = vmatpush.xpose.msk.msra.mxu3 %vm58_vm0, %v49_v17  ;;  %270 = vmatpush.xpose.msk.msra.mxu1 %vm58_vm0, %v49_v17 }
  0x26   :  { %289 = vmatpush.xpose.msk.msra.mxu2 %vm58_vm0, %v32_v18  ;;  %253 = vmatpush.xpose.msk.msra.mxu0 %vm58_vm0, %v32_v18 }
  0x27   :  { %305 = vmatpush.xpose.msk.msra.mxu3 %vm58_vm0, %v48_v19  ;;  %271 = vmatpush.xpose.msk.msra.mxu1 %vm58_vm0, %v48_v19 }
  0x2a   :  { %290 = vmatpush.xpose.msk.msra.mxu2 %vm58_vm0, %v31_v20  ;;  %254 = vmatpush.xpose.msk.msra.mxu0 %vm58_vm0, %v31_v20 }
  0x2b   :  { %306 = vmatpush.xpose.msk.msra.mxu3 %vm58_vm0, %v47_v21  ;;  %272 = vmatpush.xpose.msk.msra.mxu1 %vm58_vm0, %v47_v21 }
  0x2e   :  { %291 = vmatpush.xpose.msk.msra.mxu2 %vm58_vm0, %v30_v22  ;;  %255 = vmatpush.xpose.msk.msra.mxu0 %vm58_vm0, %v30_v22 }
  0x2f   :  { %307 = vmatpush.xpose.msk.msra.mxu3 %vm58_vm0, %v46_v23  ;;  %273 = vmatpush.xpose.msk.msra.mxu1 %vm58_vm0, %v46_v23 }
  0x32   :  { %292 = vmatpush.xpose.msk.msra.mxu2 %vm58_vm0, %v29_v24  ;;  %256 = vmatpush.xpose.msk.msra.mxu0 %vm58_vm0, %v29_v24 }
  0x33   :  { %308 = vmatpush.xpose.msk.msra.mxu3 %vm58_vm0, %v45_v25  ;;  %274 = vmatpush.xpose.msk.msra.mxu1 %vm58_vm0, %v45_v25 }
  0x36   :  { %293 = vmatpush.xpose.msk.msra.mxu2 %vm58_vm0, %v28_v26  ;;  %257 = vmatpush.xpose.msk.msra.mxu0 %vm58_vm0, %v28_v26 }
  0x37   :  { %309 = vmatpush.xpose.msk.msra.mxu3 %vm58_vm0, %v44_v27  ;;  %275 = vmatpush.xpose.msk.msra.mxu1 %vm58_vm0, %v44_v27 }
  0x3a   :  { %294 = vmatpush.xpose.msk.msra.mxu2 %vm58_vm0, %v27_v28  ;;  %258 = vmatpush.xpose.msk.msra.mxu0 %vm58_vm0, %v27_v28 }
  0x3b   :  { %310 = vmatpush.xpose.msk.msra.mxu3 %vm58_vm0, %v43_v29  ;;  %276 = vmatpush.xpose.msk.msra.mxu1 %vm58_vm0, %v43_v29 }
  0x3e   :  { %295 = vmatpush.xpose.msk.msra.mxu2 %vm58_vm0, %v26_v30  ;;  %259 = vmatpush.xpose.msk.msra.mxu0 %vm58_vm0, %v26_v30 }
  0x3f   :  { %311 = vmatpush.xpose.msk.msra.mxu3 %vm58_vm0, %v42_v31  ;;  %277 = vmatpush.xpose.msk.msra.mxu1 %vm58_vm0, %v42_v31 }
  0x41   :  { %261 = vmatmul.msk.f32.vlgmr.msra.gmra.mxu2 %vm58_vm0, %v25_v32  ;;  %260 = vmatmul.msk.f32.vlgmr.msra.gmra.mxu0 %vm58_vm0, %v24_v33 }
  0x42   :  { %279 = vmatmul.msk.f32.vlgmr.msra.gmra.mxu3 %vm58_vm0, %v25_v32  ;;  %278 = vmatmul.msk.f32.vlgmr.msra.gmra.mxu1 %vm58_vm0, %v24_v33 }
  0xbe   :  { %v178_v34 = vpop.f32.mrf.mxu0 }
  0xbf   :  { %v201_v35 = vpop.f32.mrf.mxu1  ;;  %222 = vst [vmem:[#allocation3] sm:$0xff] %v178_v34 }
  0xc0   :  { %223 = vst [vmem:[#allocation3 + $0x8] sm:$0xff] %v201_v35 }
  0xc4   :  { %v181_v36 = vpop.f32.mrf.mxu2 }
  0xc5   :  { %v204_v37 = vpop.f32.mrf.mxu3  ;;  %224 = vst [vmem:[#allocation3 + $0x10] sm:$0xff] %v181_v36 }
  0xc6   :  { %225 = vst [vmem:[#allocation3 + $0x18] sm:$0xff] %v204_v37 }
  0xc7   :  { %238 = dma.vmem_to_hbm [thread:$0]  %s231_s21, 512, %s233_s24, [#allocation4], %s342_s0, %s342_s0, %s343_s25  }
  0xc8   :  { %339 = dma.done.wait [#allocation4], 512  }
  0xc9   :  { %340 = vsyncadd [#allocation4], 4294966784 }
  0xca   :  { %243 = vsyncpa [#allocation4], 1 }

</bundles_post_ra>
